<compile_context>
chip_gen: v6e
topology: v6e:2x2x1
jax: 0.10.0
libtpu: 0.0.40
codegen_flags: <defaults>
</compile_context>

<pallas_src>
import functools

import jax
import jax.numpy as jnp
from jax.experimental import pallas as pl
from jax.experimental.pallas import tpu as pltpu

_NEG_BIG = -1e30  # finite "minus infinity" used for padded vocab columns


def _round_up(x, m):
    return ((x + m - 1) // m) * m


def generator_kernel(x_ref, w_ref, b_ref, o_ref, m_ref, l_ref):
    """One (row-tile, vocab-tile) grid step.

    x_ref: (TM, D)  bf16        w_ref: (D, TN) bf16      b_ref: (1, TN) f32
    o_ref: (TM, Vp) f32  (resident across the vocab grid axis)
    m_ref/l_ref: (TM, 1) f32 running max / running sum-of-exp scratch
    """
    j = pl.program_id(1)

    @pl.when(j == 0)
    def _():
        m_ref[...] = jnp.full(m_ref.shape, -jnp.inf, dtype=m_ref.dtype)
        l_ref[...] = jnp.zeros(l_ref.shape, dtype=l_ref.dtype)

    # bf16 operands -> MXU, f32 accumulation; bias add in f32.
    logits = jnp.dot(x_ref[...], w_ref[...],
                     preferred_element_type=jnp.float32) + b_ref[...]

    # Online logsumexp update (numerically stable across vocab tiles).
    m_prev = m_ref[...]
    m_new = jnp.maximum(m_prev, jnp.max(logits, axis=-1, keepdims=True))
    l_ref[...] = (l_ref[...] * jnp.exp(m_prev - m_new)
                  + jnp.sum(jnp.exp(logits - m_new), axis=-1, keepdims=True))
    m_ref[...] = m_new

    # Stash raw logits into the resident output slab at this vocab tile.
    tn = w_ref.shape[1]
    col0 = pl.multiple_of(j * tn, 128)
    o_ref[:, pl.ds(col0, tn)] = logits

    # Finalize: subtract the full-row logsumexp on the last vocab step.
    @pl.when(j == pl.num_programs(1) - 1)
    def _():
        lse = m_ref[...] + jnp.log(l_ref[...])
        o_ref[...] = o_ref[...] - lse


def prepare_generator_params(weight, bias, *, tile_n=None):
    """One-time parameter prep, hoisted out of the per-call hot path:
    transpose to (d_model, vocab), cast to bf16, pad vocab to a tile_n multiple."""
    vocab, d_model = weight.shape
    if tile_n is None:
        # Stream the weight in 128..2048-wide lane-dense column tiles.
        tile_n = min(2048, _round_up(vocab, 128))
    vocab_p = _round_up(vocab, tile_n)

    w_t = weight.T.astype(jnp.bfloat16)                      # (d_model, vocab)
    if vocab_p != vocab:
        w_t = jnp.pad(w_t, ((0, 0), (0, vocab_p - vocab)))
    b = bias.astype(jnp.float32)
    if vocab_p != vocab:
        b = jnp.pad(b, (0, vocab_p - vocab), constant_values=_NEG_BIG)
    b2d = b.reshape(1, vocab_p)
    return w_t, b2d, vocab, tile_n


def generator_forward(x, w_t, b2d, vocab, tile_n, *, tile_m=None):
    """x: (batch, seq, d_model); w_t: (d_model, vocab_padded) bf16;
    b2d: (1, vocab_padded) f32.  Returns (batch, seq, vocab) f32 log-probs."""
    batch, seq, d_model = x.shape
    rows = batch * seq
    vocab_p = w_t.shape[1]
    n_vocab_tiles = vocab_p // tile_n

    if tile_m is None:
        # 256-row tiles keep the MXU M dimension full on v6e/v7x (128 on v5e
        # is also a multiple); clamp for tiny inputs.  For best v7x megacore
        # use, keep rows_p // tile_m >= 2 when rows are large.
        tile_m = min(256, _round_up(rows, 8))
    rows_p = _round_up(rows, tile_m)

    x2d = x.reshape(rows, d_model).astype(jnp.bfloat16)
    if rows_p != rows:
        x2d = jnp.pad(x2d, ((0, rows_p - rows), (0, 0)))

    grid = (rows_p // tile_m, n_vocab_tiles)

    # VMEM budget: double-buffered streamed tiles + resident output slab.
    vmem_bytes = (2 * tile_m * d_model * 2        # x tile, bf16, 2 buffers
                  + 2 * d_model * tile_n * 2      # weight tile, bf16, 2 buffers
                  + 2 * 1 * tile_n * 4            # bias tile, f32, 2 buffers
                  + tile_m * vocab_p * 4          # resident output block, f32
                  + 2 * tile_m * 4)               # m / l scratch
    vmem_limit = int(min(max(2 * vmem_bytes, 32 * 1024 * 1024),
                         100 * 1024 * 1024))      # headroom under physical VMEM

    cost = pl.CostEstimate(
        flops=2 * rows_p * d_model * vocab_p,
        transcendentals=rows_p * vocab_p,          # exp in the logsumexp
        bytes_accessed=(x2d.size * 2 + w_t.size * 2 + b2d.size * 4
                        + rows_p * vocab_p * 4),
    )

    out2d = pl.pallas_call(
        generator_kernel,
        out_shape=jax.ShapeDtypeStruct((rows_p, vocab_p), jnp.float32),
        grid_spec=pltpu.PrefetchScalarGridSpec(
            num_scalar_prefetch=0,
            grid=grid,
            in_specs=[
                # x tile: varies with row axis only (re-fetch skipped over j).
                pl.BlockSpec((tile_m, d_model), lambda i, j: (i, 0)),
                # weight column stream over the vocab axis.
                pl.BlockSpec((d_model, tile_n), lambda i, j: (0, j)),
                # bias column stream over the vocab axis.
                pl.BlockSpec((1, tile_n), lambda i, j: (0, j)),
            ],
            # Output block index is constant across j -> stays VMEM-resident
            # across the vocab (reduction) axis, written back once per row tile.
            out_specs=pl.BlockSpec((tile_m, vocab_p), lambda i, j: (i, 0)),
            scratch_shapes=[
                pltpu.VMEM((tile_m, 1), jnp.float32),   # running max
                pltpu.VMEM((tile_m, 1), jnp.float32),   # running sum of exp
            ],
        ),
        compiler_params=pltpu.CompilerParams(
            dimension_semantics=("parallel", "arbitrary"),
            vmem_limit_bytes=vmem_limit,
        ),
        cost_estimate=cost,
    )(x2d, w_t, b2d)

    out2d = out2d[:rows, :vocab]
    return out2d.reshape(batch, seq, vocab)


if __name__ == "__main__":
    # Small shapes consistent with the module's forward.
    batch, seq, d_model, vocab = 2, 8, 32, 128

    key = jax.random.PRNGKey(0)
    kx, kw, kb = jax.random.split(key, 3)

    x = jax.random.normal(kx, (batch, seq, d_model), dtype=jnp.float32)
    # deterministic nn.Linear-like uniform init
    bound = 1.0 / (d_model ** 0.5)
    weight = jax.random.uniform(kw, (vocab, d_model), dtype=jnp.float32,
                                minval=-bound, maxval=bound)
    bias = jax.random.uniform(kb, (vocab,), dtype=jnp.float32,
                              minval=-bound, maxval=bound)

    # One-time parameter prep (transpose + bf16 cast + vocab padding).
    w_t, b2d, vocab_real, tile_n = prepare_generator_params(weight, bias)

    out = generator_forward(x, w_t, b2d, vocab_real, tile_n)
    out = jax.block_until_ready(out)

    # Sanity check against plain-JAX f32 reference (bf16 operand tolerance).
    ref = jax.nn.log_softmax(x @ weight.T + bias, axis=-1)
    assert out.shape == (batch, seq, vocab)
    assert jnp.allclose(out, ref, atol=2e-2, rtol=2e-2), (
        float(jnp.max(jnp.abs(out - ref))))

    print("KERNEL_OK")
</pallas_src>

<mosaic_0001>
module attributes {stable_mosaic.version = 11 : i64} {
  func.func @generator_kernel(%arg0: i32, %arg1: i32, %arg2: memref<16x32xbf16, #tpu.memory_space<vmem>>, %arg3: memref<32x128xbf16, #tpu.memory_space<vmem>>, %arg4: memref<1x128xf32, #tpu.memory_space<vmem>>, %arg5: memref<16x128xf32, #tpu.memory_space<vmem>>, %arg6: memref<16x1xf32, #tpu.memory_space<vmem>>, %arg7: memref<16x1xf32, #tpu.memory_space<vmem>>) attributes {dimension_semantics = [#tpu.dimension_semantics<parallel>, #tpu.dimension_semantics<arbitrary>], iteration_bounds = array<i64: 1, 1>, scalar_prefetch = 0 : i64, scratch_operands = 2 : i64, tpu.core_type = #tpu.core_type<tc>, window_params = [{transform_indices = @transform_0, window_bounds = array<i64: 16, 32>}, {transform_indices = @transform_1, window_bounds = array<i64: 32, 128>}, {transform_indices = @transform_2, window_bounds = array<i64: 1, 128>}, {transform_indices = @transform_3, window_bounds = array<i64: 16, 128>}]} {
    %c0_i32 = arith.constant 0 : i32
    %0 = arith.cmpi eq, %arg1, %c0_i32 : i32
    %1 = arith.extui %0 : i1 to i32
    %c0_i32_0 = arith.constant 0 : i32
    %2 = arith.cmpi ne, %1, %c0_i32_0 : i32
    scf.if %2 {
      %cst_19 = arith.constant 0xFF800000 : f32
      %32 = vector.broadcast %cst_19 : f32 to vector<16x1xf32>
      %c0_20 = arith.constant 0 : index
      %c0_21 = arith.constant 0 : index
      %33 = vector.load %arg6[%c0_20, %c0_21] : memref<16x1xf32, #tpu.memory_space<vmem>>, vector<16x1xf32>
      tpu.vector_store %arg6[%c0_20, %c0_21], %32 {strides = array<i32>} : memref<16x1xf32, #tpu.memory_space<vmem>>, vector<16x1xf32>,
      %cst_22 = arith.constant 0.000000e+00 : f32
      %34 = vector.broadcast %cst_22 : f32 to vector<16x1xf32>
      %c0_23 = arith.constant 0 : index
      %c0_24 = arith.constant 0 : index
      %35 = vector.load %arg7[%c0_23, %c0_24] : memref<16x1xf32, #tpu.memory_space<vmem>>, vector<16x1xf32>
      tpu.vector_store %arg7[%c0_23, %c0_24], %34 {strides = array<i32>} : memref<16x1xf32, #tpu.memory_space<vmem>>, vector<16x1xf32>,
    } else {
    }
    %c0 = arith.constant 0 : index
    %c0_1 = arith.constant 0 : index
    %3 = vector.load %arg2[%c0, %c0_1] : memref<16x32xbf16, #tpu.memory_space<vmem>>, vector<16x32xbf16>
    %c0_2 = arith.constant 0 : index
    %c0_3 = arith.constant 0 : index
    %4 = vector.load %arg3[%c0_2, %c0_3] : memref<32x128xbf16, #tpu.memory_space<vmem>>, vector<32x128xbf16>
    %cst = arith.constant dense<0.000000e+00> : vector<16x128xf32>
    %5 = tpu.matmul %3, %4, %cst {dimension_numbers = #tpu.dot_dimension_numbers<[1], [0], [0], [1], [0, 0, 1, 1], [], []>} : vector<16x32xbf16>, vector<32x128xbf16>, vector<16x128xf32> -> vector<16x128xf32>
    %c0_4 = arith.constant 0 : index
    %c0_5 = arith.constant 0 : index
    %6 = vector.load %arg4[%c0_4, %c0_5] : memref<1x128xf32, #tpu.memory_space<vmem>>, vector<1x128xf32>
    %7 = vector.broadcast %6 : vector<1x128xf32> to vector<16x128xf32>
    %8 = arith.addf %5, %7 : vector<16x128xf32>
    %c0_6 = arith.constant 0 : index
    %c0_7 = arith.constant 0 : index
    %9 = vector.load %arg6[%c0_6, %c0_7] : memref<16x1xf32, #tpu.memory_space<vmem>>, vector<16x1xf32>
    %cst_8 = arith.constant dense<0xFF800000> : vector<16xf32>
    %10 = vector.multi_reduction <maximumf>, %8, %cst_8 [1] : vector<16x128xf32> to vector<16xf32>
    %11 = vector.shape_cast %10 : vector<16xf32> to vector<16x1xf32>
    %12 = arith.maximumf %9, %11 : vector<16x1xf32>
    %c0_9 = arith.constant 0 : index
    %c0_10 = arith.constant 0 : index
    %13 = vector.load %arg7[%c0_9, %c0_10] : memref<16x1xf32, #tpu.memory_space<vmem>>, vector<16x1xf32>
    %14 = arith.subf %9, %12 : vector<16x1xf32>
    %15 = math.exp %14 : vector<16x1xf32>
    %16 = arith.mulf %13, %15 : vector<16x1xf32>
    %17 = vector.broadcast %12 : vector<16x1xf32> to vector<16x128xf32>
    %18 = arith.subf %8, %17 : vector<16x128xf32>
    %19 = math.exp %18 : vector<16x128xf32>
    %cst_11 = arith.constant dense<0.000000e+00> : vector<16xf32>
    %20 = vector.multi_reduction <add>, %19, %cst_11 [1] : vector<16x128xf32> to vector<16xf32>
    %21 = vector.shape_cast %20 : vector<16xf32> to vector<16x1xf32>
    %22 = arith.addf %16, %21 : vector<16x1xf32>
    %c0_12 = arith.constant 0 : index
    %c0_13 = arith.constant 0 : index
    %23 = vector.load %arg7[%c0_12, %c0_13] : memref<16x1xf32, #tpu.memory_space<vmem>>, vector<16x1xf32>
    tpu.vector_store %arg7[%c0_12, %c0_13], %22 {strides = array<i32>} : memref<16x1xf32, #tpu.memory_space<vmem>>, vector<16x1xf32>,
    %c0_14 = arith.constant 0 : index
    %c0_15 = arith.constant 0 : index
    %24 = vector.load %arg6[%c0_14, %c0_15] : memref<16x1xf32, #tpu.memory_space<vmem>>, vector<16x1xf32>
    tpu.vector_store %arg6[%c0_14, %c0_15], %12 {strides = array<i32>} : memref<16x1xf32, #tpu.memory_space<vmem>>, vector<16x1xf32>,
    %c128_i32 = arith.constant 128 : i32
    %25 = arith.muli %arg1, %c128_i32 : i32
    %26 = tpu.assume_multiple %25, 128 : i32
    %c0_16 = arith.constant 0 : index
    %27 = arith.index_cast %26 : i32 to index
    %28 = vector.load %arg5[%c0_16, %27] : memref<16x128xf32, #tpu.memory_space<vmem>>, vector<16x128xf32>
    tpu.vector_store %arg5[%c0_16, %27], %8 {strides = array<i32>} : memref<16x128xf32, #tpu.memory_space<vmem>>, vector<16x128xf32>,
    %c0_i32_17 = arith.constant 0 : i32
    %29 = arith.cmpi eq, %arg1, %c0_i32_17 : i32
    %30 = arith.extui %29 : i1 to i32
    %c0_i32_18 = arith.constant 0 : i32
    %31 = arith.cmpi ne, %30, %c0_i32_18 : i32
    scf.if %31 {
      %c0_19 = arith.constant 0 : index
      %c0_20 = arith.constant 0 : index
      %32 = vector.load %arg6[%c0_19, %c0_20] : memref<16x1xf32, #tpu.memory_space<vmem>>, vector<16x1xf32>
      %c0_21 = arith.constant 0 : index
      %c0_22 = arith.constant 0 : index
      %33 = vector.load %arg7[%c0_21, %c0_22] : memref<16x1xf32, #tpu.memory_space<vmem>>, vector<16x1xf32>
      %34 = math.log %33 : vector<16x1xf32>
      %35 = arith.addf %32, %34 : vector<16x1xf32>
      %c0_23 = arith.constant 0 : index
      %c0_24 = arith.constant 0 : index
      %36 = vector.load %arg5[%c0_23, %c0_24] : memref<16x128xf32, #tpu.memory_space<vmem>>, vector<16x128xf32>
      %37 = vector.broadcast %35 : vector<16x1xf32> to vector<16x128xf32>
      %38 = arith.subf %36, %37 : vector<16x128xf32>
      %c0_25 = arith.constant 0 : index
      %c0_26 = arith.constant 0 : index
      %39 = vector.load %arg5[%c0_25, %c0_26] : memref<16x128xf32, #tpu.memory_space<vmem>>, vector<16x128xf32>
      tpu.vector_store %arg5[%c0_25, %c0_26], %38 {strides = array<i32>} : memref<16x128xf32, #tpu.memory_space<vmem>>, vector<16x128xf32>,
    } else {
    }
    return
  }
  func.func @transform_0(%arg0: i32, %arg1: i32) -> (i32, i32) {
    %c0_i32 = arith.constant 0 : i32
    %c0_i32_0 = arith.constant 0 : i32
    return %arg0, %c0_i32 : i32, i32
  }
  func.func @transform_1(%arg0: i32, %arg1: i32) -> (i32, i32) {
    %c0_i32 = arith.constant 0 : i32
    %c0_i32_0 = arith.constant 0 : i32
    return %c0_i32, %arg1 : i32, i32
  }
  func.func @transform_2(%arg0: i32, %arg1: i32) -> (i32, i32) {
    %c0_i32 = arith.constant 0 : i32
    %c0_i32_0 = arith.constant 0 : i32
    return %c0_i32, %arg1 : i32, i32
  }
  func.func @transform_3(%arg0: i32, %arg1: i32) -> (i32, i32) {
    %c0_i32 = arith.constant 0 : i32
    %c0_i32_0 = arith.constant 0 : i32
    return %arg0, %c0_i32 : i32, i32
  }
}

</mosaic_0001>

<bundles_post_ra>
// kernel: tpu_custom_call.1
= control target key start
LH: loop header
LB: loop body
LE: loop exit
PB: predicated region body
PF: predicated region fallthrough
CT: control target
= control target key end

     0   :  { %8 = vsyncpa [#allocation5], 0  ;;  %s398_s0 = inlined_call_operand.hbm [shape: bf16[16,32], index: 0, kind: input, shape index: {}]   ;;  %s399_s1 = inlined_call_operand.hbm [shape: bf16[32,128], index: 1, kind: input, shape index: {}]   ;;  %s400_s2 = inlined_call_operand.vmem [shape: f32[1,128], index: 2, kind: input, shape index: {}]   ;;  %s401_s3 = inlined_call_operand.hbm [shape: f32[16,128], index: 3, kind: output, shape index: {}]  }
   0x1   :  { %9 = vsyncpa [#allocation8], 0 }
   0x2   :  { %10 = vsyncpa [#allocation6], 0  ;;  %s337_s12 = smov [#allocation4]  }
   0x3   :  { %s16_s13 = sshll.u32 %s337_s12, 4  ;;  %s17_s13 = int_to_ptr.vmem [resolvable:$true] %s16_s13 }
   0x4   :  { %s279_s14 = scalar_lea.vmem %s17_s13, 128  ;;  %p284_p1 = scmp.lt.s32.totalorder %s17_s13, %s17_s13 }
   0x5   :  { %p280_p0 = scmp.ne.s32.totalorder %s17_s13, %s279_s14  ;;  %p285_p2 = scmp.lt.s32.totalorder %s279_s14, %s279_s14 }
   0x7   :  { %p286_p3 = por %p285_p2, %p284_p1 }
   0x9   :  { %p287_p4 = pnand %p286_p3, %p280_p0 }
   0xb   :  { %290 = shalt.err (!%p287_p4)
}
   0xc   :  { %s338_s15 = smov 64   ;;  %s339_s16 = smov 4  }
   0xd   :  { %22 = dma.hbm_to_vmem [thread:$0]  %s398_s0, 128, %s17_s13, [#allocation5], %s338_s15, %s338_s15, %s339_s16  }
   0xe   :  { %s340_s19 = smov [#allocation7]  }
   0xf   :  { %s28_s20 = sshll.u32 %s340_s19, 4  ;;  %s29_s20 = int_to_ptr.vmem [resolvable:$true] %s28_s20 }
  0x10   :  { %s299_s21 = scalar_lea.vmem %s29_s20, 256  ;;  %p304_p6 = scmp.lt.s32.totalorder %s29_s20, %s29_s20 }
  0x11   :  { %p300_p5 = scmp.ne.s32.totalorder %s29_s20, %s299_s21  ;;  %p305_p7 = scmp.lt.s32.totalorder %s299_s21, %s299_s21 }
  0x13   :  { %p306_p8 = por %p305_p7, %p304_p6 }
  0x15   :  { %p307_p9 = pnand %p306_p8, %p300_p5 }
  0x17   :  { %310 = shalt.err (!%p307_p9)
}
  0x18   :  { %34 = dma.hbm_to_vmem [thread:$0]  %s399_s1, 256, %s29_s20, [#allocation8], %s338_s15, %s338_s15, %s339_s16  }
  0x19   :  { %331 = dma.done.wait [#allocation5], 128  }
  0x1a   :  { %332 = vsyncadd [#allocation5], 4294967168 }
  0x1b   :  { %333 = dma.done.wait [#allocation8], 256  }
  0x1c   :  { %334 = vsyncadd [#allocation8], 4294967040  ;;  %vm48_vm0 = vcmask 7168   ;;  %v341_v0 = vmov 0.0   ;;  %vm342_vm1 = vmmov 0   ;;  %v256_v1 = vld [vmem:[#allocation7 + $0x8] sm:$0xff]  }
  0x1d   :  { %51 = vst.msk [vmem:[#allocation3] sm:$0xff] %vm48_vm0, %v341_v0  ;;  %52 = vst.msk [vmem:[#allocation3 + $0x8] sm:$0xff] %vm48_vm0, %v341_v0  ;;  %235 = vmatprep.subr.bf16.mxu0 %v341_v0  ;;  %239 = vmatprep.mubr.msk.bf16.mxu0 %vm342_vm1, %v341_v0  ;;  %v257_v2 = vld [vmem:[#allocation7] sm:$0xff]   ;;  %v258_v3 = vld [vmem:[#allocation4] sm:$0xff]   ;;  %vm83_vm2 = vcmask 261120   ;;  %v343_v4 = vmov -inf  }
  0x1e   :  { %236 = vmatpush3.bf16.msra.mxu0 %v256_v1  ;;  %49 = vst.msk [vmem:[#allocation2] sm:$0xff] %vm48_vm0, %v343_v4  ;;  %50 = vst.msk [vmem:[#allocation2 + $0x8] sm:$0xff] %vm48_vm0, %v343_v4  ;;  %v227_v5 = vld [vmem:[%s400_s2] ss:$0 sm:$0xff]  ;;  %v344_v12 = vmov 0   ;;  %s345_s2 = smov [#allocation9]  }
  0x1f   :  { %237 = vmatprep.subr.bf16.mxu0 %v341_v0  ;;  %254 = vset.pattern.permute.xlu1 %v344_v12  ;;  %s213_s24 = sshll.u32 %s345_s2, 4  ;;  %s214_s24 = int_to_ptr.vmem [resolvable:$true] %s213_s24 }
  0x20   :  { %255 = vset.pattern.permute.xlu0 %v344_v12  ;;  %s311_s25 = scalar_lea.vmem %s214_s24, 256  ;;  %p316_p11 = scmp.lt.s32.totalorder %s214_s24, %s214_s24 }
  0x21   :  { %p312_p10 = scmp.ne.s32.totalorder %s214_s24, %s311_s25  ;;  %p317_p12 = scmp.lt.s32.totalorder %s311_s25, %s311_s25 }
  0x22   :  { %238 = vmatpush3.bf16.msra.mxu0 %v257_v2 }
  0x23   :  { %p318_p13 = por %p317_p12, %p316_p11 }
  0x24   :  { %v136_v32 = vld [vmem:[#allocation3] sm:$0xff]  ;;  %v137_v36 = vld [vmem:[#allocation3 + $0x8] sm:$0xff] }
  0x25   :  { %240 = vmatmul.mubr.msk.bf16.vlgmr.msra.gmra.mxu0 %vm83_vm2, %v258_v3  ;;  %v128_v13 = vld [vmem:[#allocation2] sm:$0xff]  ;;  %v129_v16 = vld [vmem:[#allocation2 + $0x8] sm:$0xff]  ;;  %p319_p0 = pnand %p318_p13, %p312_p10 }
  0xe5   :  { %v121_v6 = vpop.f32.mrf.mxu0 }
  0xe6   :  { %v381_v7 = vadd.f32 %v227_v5, %v121_v6 }
  0xe7   :  { %v241_v8 = vpop.f32.mrf.mxu0 }
  0xe8   :  { %130 = vmax.xlane.f32.xlu0 %v381_v7 }
  0xe9   :  { %v124_v9 = vpop.f32.mrf.mxu0 }
  0xea   :  { %v384_v10 = vadd.f32 %v227_v5, %v124_v9 }
  0xeb   :  { %v242_v11 = vpop.f32.mrf.mxu0 }
  0xec   :  { %132 = vmax.xlane.f32.xlu0 %v384_v10 }
 0x171   :  { %v131_v14 = vpop.xlane.xlu0 %130 }
 0x172   :  { %v134_v15 = vmax.f32 %v128_v13, %v131_v14 }
 0x174   :  { %v138_v17 = vsub.f32 %v128_v13, %v134_v15  ;;  %171 = vst.msk [vmem:[#allocation2] sm:$0xff] %vm48_vm0, %v134_v15  ;;  %148 = vperm.xlu1 %254, %v134_v15  }
 0x175   :  { %v133_v18 = vpop.xlane.xlu0 %132 }
 0x176   :  { %v135_v19 = vmax.f32 %v129_v16, %v133_v18  ;;  %v140_v29 = vmul.f32 1.442695, %v138_v17 }
 0x178   :  { %v139_v20 = vsub.f32 %v129_v16, %v135_v19  ;;  %172 = vst.msk [vmem:[#allocation2 + $0x8] sm:$0xff] %vm48_vm0, %v135_v19  ;;  %153 = vperm.xlu1 %254, %v135_v19  }
 0x17a   :  { %v142_v30 = vmul.f32 1.442695, %v139_v20 }
 0x17b   :  { %v182_v45 = vld [vmem:[#allocation2] sm:$0xff] }
 0x17f   :  { %v183_v49 = vld [vmem:[#allocation2 + $0x8] sm:$0xff] }
 0x1ef   :  { %v149_v21 = vpop.permute.xlu1 %148 }
 0x1f0   :  { %v156_v22 = vsub.f32 %v381_v7, %v149_v21 }
 0x1f2   :  { %v158_v23 = vmul.f32 1.442695, %v156_v22 }
 0x1f3   :  { %v154_v24 = vpop.permute.xlu1 %153 }
 0x1f4   :  { %259 = vpow2.f32 %v158_v23  ;;  %v157_v25 = vsub.f32 %v384_v10, %v154_v24 }
 0x1f6   :  { %v160_v26 = vmul.f32 1.442695, %v157_v25 }
 0x1f8   :  { %261 = vpow2.f32 %v160_v26 }
 0x1f9   :  { %263 = vpow2.f32 %v140_v29 }
 0x1fa   :  { %265 = vpow2.f32 %v142_v30 }
 0x201   :  { %v260_v27 = vpop.eup %259 }
 0x202   :  { %162 = vadd.xlane.f32.xlu0 %v260_v27 }
 0x205   :  { %v262_v28 = vpop.eup %261 }
 0x206   :  { %164 = vadd.xlane.f32.xlu1 %v262_v28  ;;  %v264_v31 = vpop.eup %263 }
 0x207   :  { %v144_v33 = vmul.f32 %v264_v31, %v136_v32  ;;  %v266_v34 = vpop.eup %265 }
 0x208   :  { %v145_v38 = vmul.f32 %v266_v34, %v137_v36 }
 0x28b   :  { %v163_v35 = vpop.xlane.xlu0 %162 }
 0x28c   :  { %v166_v37 = vadd.f32 %v163_v35, %v144_v33 }
 0x28e   :  { %169 = vst.msk [vmem:[#allocation3] sm:$0xff] %vm48_vm0, %v166_v37 }
 0x28f   :  { %v165_v39 = vpop.xlane.xlu1 %164 }
 0x290   :  { %v167_v40 = vadd.f32 %v165_v39, %v145_v38 }
 0x292   :  { %170 = vst.msk [vmem:[#allocation3 + $0x8] sm:$0xff] %vm48_vm0, %v167_v40 }
 0x295   :  { %v184_v41 = vld [vmem:[#allocation3] sm:$0xff] }
 0x296   :  { %267 = vlog2.f32 %v184_v41 }
 0x299   :  { %v185_v42 = vld [vmem:[#allocation3 + $0x8] sm:$0xff] }
 0x29a   :  { %269 = vlog2.f32 %v185_v42 }
 0x2a3   :  { %v268_v43 = vpop.eup %267 }
 0x2a4   :  { %v187_v44 = vmul.f32 0.6931472, %v268_v43 }
 0x2a6   :  { %v190_v46 = vadd.f32 %v187_v44, %v182_v45 }
 0x2a7   :  { %v270_v47 = vpop.eup %269 }
 0x2a8   :  { %196 = vperm.xlu0 %255, %v190_v46   ;;  %v189_v48 = vmul.f32 0.6931472, %v270_v47 }
 0x2aa   :  { %v191_v50 = vadd.f32 %v189_v48, %v183_v49 }
 0x2ac   :  { %201 = vperm.xlu1 %254, %v191_v50  }
 0x323   :  { %v197_v51 = vpop.permute.xlu0 %196 }
 0x324   :  { %v204_v52 = vsub.f32 %v381_v7, %v197_v51 }
 0x326   :  { %206 = vst [vmem:[#allocation9] sm:$0xff] %v204_v52 }
 0x327   :  { %v202_v53 = vpop.permute.xlu1 %201 }
 0x328   :  { %v205_v54 = vsub.f32 %v384_v10, %v202_v53 }
 0x32a   :  { %207 = vst [vmem:[#allocation9 + $0x8] sm:$0xff] %v205_v54 }
 0x32b   :  { %322 = shalt.err (!%p319_p0)
}
 0x32c   :  { %s346_s26 = smov 128   ;;  %s347_s27 = smov 8  }
 0x32d   :  { %219 = dma.vmem_to_hbm [thread:$0]  %s214_s24, 256, %s401_s3, [#allocation6], %s346_s26, %s346_s26, %s347_s27  }
 0x32e   :  { %335 = dma.done.wait [#allocation6], 256  }
 0x32f   :  { %336 = vsyncadd [#allocation6], 4294967040 }
 0x330   :  { %223 = vsyncpa [#allocation5], 1 }
 0x331   :  { %224 = vsyncpa [#allocation8], 1 }
 0x332   :  { %225 = vsyncpa [#allocation6], 1 }

</bundles_post_ra>
